<compile_context>
chip_gen: v5e
topology: v5e:2x2
jax: 0.10.0
libtpu: 0.0.40
codegen_flags: <defaults>
</compile_context>

<pallas_src>
import math
import warnings
from functools import partial

import jax
import jax.numpy as jnp
from jax.experimental import pallas as pl
from jax.experimental.pallas import tpu as pltpu

warnings.filterwarnings("ignore", message="Some donated buffers were not usable")


# ------------------------------ tiling helpers --------------------------------

def _round_up(x, m):
    return ((x + m - 1) // m) * m


def _pick_tile(dim, preferred):
    """Largest preferred tile that evenly divides `dim`, else the full dim.
    Only used for *static weight* dims (multiples of 128 at real model sizes);
    dynamic-ish dims (M rows, KV length, packed query rows) are padded instead."""
    for t in preferred:
        if t <= dim and dim % t == 0:
            return t
    return dim


# ------------------- tiled linear:  y = x @ w_t,  w_t = W^T -------------------

def _linear_kernel(x_ref, w_ref, o_ref, acc_ref):
    # x: (tm, tk) bf16, w: (tk, tn) bf16 -> canonical MXU feed, f32 accumulate.
    @pl.when(pl.program_id(2) == 0)
    def _():
        acc_ref[...] = jnp.zeros_like(acc_ref)

    acc_ref[...] += jnp.dot(x_ref[...], w_ref[...],
                            preferred_element_type=jnp.float32)

    @pl.when(pl.program_id(2) == pl.num_programs(2) - 1)
    def _():
        o_ref[...] = acc_ref[...].astype(o_ref.dtype)


def linear(x2d, w_t, out_dtype=None):
    """x2d: (M, K); w_t: (K, N) pre-transposed weight. bf16 MXU, f32 accumulate."""
    M, K = x2d.shape
    K2, N = w_t.shape
    assert K == K2
    out_dtype = out_dtype if out_dtype is not None else x2d.dtype

    x2d = x2d.astype(jnp.bfloat16)
    w_t = w_t.astype(jnp.bfloat16)

    # Rows (B*S) can be anything -> pad to the row tile; weight dims are static.
    tm = min(256, _round_up(M, 8))
    M_pad = _round_up(M, tm)
    if M_pad != M:
        x2d = jnp.pad(x2d, ((0, M_pad - M), (0, 0)))
    tn = _pick_tile(N, (512, 256, 128))
    tk = _pick_tile(K, (512, 256, 128))
    grid = (M_pad // tm, N // tn, K // tk)

    out = pl.pallas_call(
        _linear_kernel,
        out_shape=jax.ShapeDtypeStruct((M_pad, N), out_dtype),
        grid=grid,
        in_specs=[
            pl.BlockSpec((tm, tk), lambda i, j, k: (i, k)),
            pl.BlockSpec((tk, tn), lambda i, j, k: (k, j)),
        ],
        out_specs=pl.BlockSpec((tm, tn), lambda i, j, k: (i, j)),
        scratch_shapes=[pltpu.VMEM((tm, tn), jnp.float32)],
        compiler_params=pltpu.CompilerParams(
            dimension_semantics=("parallel", "parallel", "arbitrary")),
    )(x2d, w_t)
    return out[:M] if M_pad != M else out


# -------------- GQA flash attention (online softmax over KV blocks) -----------

def _flash_attn_kernel(q_ref, k_ref, v_ref, o_ref, m_ref, l_ref, acc_ref,
                       *, scale, kv_len, t_blk, need_mask):
    kv_step = pl.program_id(3)

    @pl.when(kv_step == 0)
    def _():
        m_ref[...] = jnp.full_like(m_ref, -jnp.inf)
        l_ref[...] = jnp.zeros_like(l_ref)
        acc_ref[...] = jnp.zeros_like(acc_ref)

    # Fold the softmax scale into q: q_blk*D multiplies instead of q_blk*t_blk.
    q = q_ref[...] * scale            # (q_blk, D) bf16
    k = k_ref[...]                    # (t_blk, D) bf16
    v = v_ref[...]                    # (t_blk, D) bf16

    # scores = q @ k^T, contracting D-vs-D directly (no transpose op), f32 out.
    s = jax.lax.dot_general(
        q, k, dimension_numbers=(((1,), (1,)), ((), ())),
        preferred_element_type=jnp.float32)

    if need_mask:  # static: only present when kv_len % t_blk != 0 (padded tail)
        col = jax.lax.broadcasted_iota(jnp.int32, s.shape, 1) + kv_step * t_blk
        s = jnp.where(col < kv_len, s, -jnp.inf)

    m_prev = m_ref[...]
    m_new = jnp.maximum(m_prev, jnp.max(s, axis=-1, keepdims=True))
    alpha = jnp.exp(m_prev - m_new)
    p = jnp.exp(s - m_new)
    l_ref[...] = alpha * l_ref[...] + jnp.sum(p, axis=-1, keepdims=True)
    acc_ref[...] = alpha * acc_ref[...] + jnp.dot(
        p.astype(v.dtype), v, preferred_element_type=jnp.float32)
    m_ref[...] = m_new

    @pl.when(kv_step == pl.num_programs(3) - 1)
    def _():
        inv_l = pl.reciprocal(l_ref[...], approx=True)
        o_ref[...] = (acc_ref[...] * inv_l).astype(o_ref.dtype)


def gqa_flash_attention(q, k_cache, v_cache, *, scale, kv_len):
    """q: (B, n_kv, G, D) with G = n_rep*S (query heads sharing a KV head packed
    along rows).  k_cache/v_cache: (B_max, n_kv, T_max, D) -- the FULL cache is
    passed untouched; only columns [0, kv_len) are attended (tail masked)."""
    B, Hkv, G, D = q.shape
    maxB, _, maxT, _ = k_cache.shape
    assert B <= maxB

    q_blk = min(256, _round_up(G, 8))
    G_pad = _round_up(G, q_blk)
    t_blk = min(512, _round_up(kv_len, 8))
    T_pad = _round_up(kv_len, t_blk)

    q = q.astype(jnp.bfloat16)
    if G_pad != G:
        q = jnp.pad(q, ((0, 0), (0, 0), (0, G_pad - G), (0, 0)))
    if T_pad > maxT:  # rare: cache shorter than one padded tile of context
        k_cache = jnp.pad(k_cache, ((0, 0), (0, 0), (0, T_pad - maxT), (0, 0)))
        v_cache = jnp.pad(v_cache, ((0, 0), (0, 0), (0, T_pad - maxT), (0, 0)))

    grid = (B, Hkv, G_pad // q_blk, T_pad // t_blk)
    kern = partial(_flash_attn_kernel, scale=scale, kv_len=kv_len, t_blk=t_blk,
                   need_mask=(kv_len % t_blk != 0))
    # TODO(synk): on v5e, deepen K/V pipelining with pipeline_mode=pl.Buffered(3).
    out = pl.pallas_call(
        kern,
        out_shape=jax.ShapeDtypeStruct((B, Hkv, G_pad, D), jnp.bfloat16),
        grid=grid,
        in_specs=[
            pl.BlockSpec((None, None, q_blk, D), lambda b, h, i, t: (b, h, i, 0)),
            pl.BlockSpec((None, None, t_blk, D), lambda b, h, i, t: (b, h, t, 0)),
            pl.BlockSpec((None, None, t_blk, D), lambda b, h, i, t: (b, h, t, 0)),
        ],
        out_specs=pl.BlockSpec((None, None, q_blk, D), lambda b, h, i, t: (b, h, i, 0)),
        scratch_shapes=[
            pltpu.VMEM((q_blk, 1), jnp.float32),   # running max m
            pltpu.VMEM((q_blk, 1), jnp.float32),   # running denom l
            pltpu.VMEM((q_blk, D), jnp.float32),   # running output accumulator
        ],
        compiler_params=pltpu.CompilerParams(
            dimension_semantics=("parallel", "parallel", "parallel", "arbitrary")),
    )(q, k_cache, v_cache)
    return out[:, :, :G] if G_pad != G else out


# --------------------------------- JAX glue -----------------------------------

def apply_rotary_embedding(x, freqs_complex):
    # x: (B, S, H, D), freqs_complex: (S, D//2) complex64.  Matches
    # torch.view_as_complex(x.reshape(..., -1, 2)) * freqs, view_as_real.
    # TODO(synk): fuse this rotation into the wq/wk projection kernel epilogue
    # (pltpu.roll even/odd swizzle on the (tm, H*D) output tile) to drop the
    # extra HBM round trip of q and k.
    B, S, H, D = x.shape
    xf = x.astype(jnp.float32).reshape(B, S, H, D // 2, 2)
    cos = jnp.real(freqs_complex)[None, :, None, :]
    sin = jnp.imag(freqs_complex)[None, :, None, :]
    out_even = xf[..., 0] * cos - xf[..., 1] * sin
    out_odd = xf[..., 0] * sin + xf[..., 1] * cos
    out = jnp.stack([out_even, out_odd], axis=-1).reshape(B, S, H, D)
    return out.astype(x.dtype)


def prepare_params(params):
    """One-time: transpose PyTorch (out,in) weights to (in,out) and cast to bf16
    so the GEMM kernel always sees the canonical (tm,tk) x (tk,tn) MXU feed."""
    return {name + "_t": jnp.asarray(w).T.astype(jnp.bfloat16)
            for name, w in params.items()}


def self_attention_forward(params, cache_k, cache_v, x, start_pos, freqs_complex,
                           n_heads_q, n_kv_heads, head_dim):
    """params: prepared (transposed bf16) weights.  cache_k/v: bf16, layout
    (B_max, n_kv_heads, T_max, head_dim).  start_pos is a static Python int."""
    B, S, dim = x.shape
    n_rep = n_heads_q // n_kv_heads
    assert n_heads_q == n_kv_heads * n_rep

    x2d = x.reshape(B * S, dim)
    xq = linear(x2d, params["wq_t"], out_dtype=jnp.bfloat16).reshape(B, S, n_heads_q, head_dim)
    xk = linear(x2d, params["wk_t"], out_dtype=jnp.bfloat16).reshape(B, S, n_kv_heads, head_dim)
    xv = linear(x2d, params["wv_t"], out_dtype=jnp.bfloat16).reshape(B, S, n_kv_heads, head_dim)

    xq = apply_rotary_embedding(xq, freqs_complex)
    xk = apply_rotary_embedding(xk, freqs_complex)

    # KV cache lives natively as (B_max, n_kv, T_max, D): only the fresh S tokens
    # are transposed/cast; the attended cache is never transposed or copied.
    xk_t = jnp.transpose(xk, (0, 2, 1, 3)).astype(cache_k.dtype)
    xv_t = jnp.transpose(xv, (0, 2, 1, 3)).astype(cache_v.dtype)
    cache_k = jax.lax.dynamic_update_slice(cache_k, xk_t, (0, 0, start_pos, 0))
    cache_v = jax.lax.dynamic_update_slice(cache_v, xv_t, (0, 0, start_pos, 0))
    # (In-place update comes from jit donate_argnums on the cache buffers.)

    T = start_pos + S
    # Pack the n_rep query heads that share a KV head along the row axis:
    # (B, Hq, S, D) -> (B, n_kv, n_rep*S, D).  No KV duplication (no repeat_kv).
    q = jnp.transpose(xq, (0, 2, 1, 3)).reshape(B, n_kv_heads, n_rep * S, head_dim)

    out = gqa_flash_attention(q, cache_k, cache_v,
                              scale=1.0 / math.sqrt(head_dim), kv_len=T)
    out = out.reshape(B, n_heads_q, S, head_dim)
    out = jnp.transpose(out, (0, 2, 1, 3)).reshape(B * S, n_heads_q * head_dim)

    out = linear(out, params["wo_t"], out_dtype=x.dtype).reshape(B, S, dim)
    return out, cache_k, cache_v


def precompute_freqs_complex(head_dim, start_pos, seq_len, theta=10000.0):
    inv_freq = 1.0 / (theta ** (jnp.arange(0, head_dim, 2, dtype=jnp.float32) / head_dim))
    positions = jnp.arange(start_pos, start_pos + seq_len, dtype=jnp.float32)
    angles = jnp.outer(positions, inv_freq)                  # (seq, head_dim//2)
    return jnp.exp(1j * angles.astype(jnp.complex64))        # complex64


# --------------------- plain-JAX reference (for validation) -------------------

def _reference_forward(params, cache_k, cache_v, x, start_pos, freqs_complex,
                       n_heads_q, n_kv_heads, head_dim):
    # Full f32, PyTorch weight layout, PyTorch cache layout (B, T, n_kv, D).
    B, S, dim = x.shape
    n_rep = n_heads_q // n_kv_heads
    x2d = x.reshape(B * S, dim)
    xq = (x2d @ params["wq"].T).reshape(B, S, n_heads_q, head_dim)
    xk = (x2d @ params["wk"].T).reshape(B, S, n_kv_heads, head_dim)
    xv = (x2d @ params["wv"].T).reshape(B, S, n_kv_heads, head_dim)
    xq = apply_rotary_embedding(xq, freqs_complex)
    xk = apply_rotary_embedding(xk, freqs_complex)
    ck = jax.lax.dynamic_update_slice(cache_k, xk, (0, start_pos, 0, 0))
    cv = jax.lax.dynamic_update_slice(cache_v, xv, (0, start_pos, 0, 0))
    keys = jnp.repeat(ck[:B, :start_pos + S], n_rep, axis=2)
    vals = jnp.repeat(cv[:B, :start_pos + S], n_rep, axis=2)
    q = jnp.transpose(xq, (0, 2, 1, 3))
    k = jnp.transpose(keys, (0, 2, 1, 3))
    v = jnp.transpose(vals, (0, 2, 1, 3))
    scores = jnp.einsum("bhsd,bhtd->bhst", q, k) / math.sqrt(head_dim)
    p = jax.nn.softmax(scores.astype(jnp.float32), axis=-1).astype(q.dtype)
    o = jnp.einsum("bhst,bhtd->bhsd", p, v)
    o = jnp.transpose(o, (0, 2, 1, 3)).reshape(B, S, n_heads_q * head_dim)
    return o @ params["wo"].T


# ----------------------------------- main --------------------------------------

if __name__ == "__main__":
    # Small ModelArgs: dim=32, n_heads=4, n_kv_heads=2 -> head_dim=8, n_rep=2.
    dim = 32
    n_heads_q = 4
    n_kv_heads = 2
    head_dim = dim // n_heads_q
    max_batch_size = 2
    max_seq_len = 16

    batch = 2
    seq_len = 8
    start_pos = 4  # cache positions [0, start_pos) are zeros, as in a fresh module

    key = jax.random.PRNGKey(0)
    kx, kq, kk, kv, ko = jax.random.split(key, 5)

    x = jax.random.normal(kx, (batch, seq_len, dim), dtype=jnp.float32)
    params = {
        "wq": 0.05 * jax.random.normal(kq, (n_heads_q * head_dim, dim), dtype=jnp.float32),
        "wk": 0.05 * jax.random.normal(kk, (n_kv_heads * head_dim, dim), dtype=jnp.float32),
        "wv": 0.05 * jax.random.normal(kv, (n_kv_heads * head_dim, dim), dtype=jnp.float32),
        "wo": 0.05 * jax.random.normal(ko, (dim, n_heads_q * head_dim), dtype=jnp.float32),
    }

    freqs_complex = precompute_freqs_complex(head_dim, start_pos, seq_len)

    # Reference (f32, PyTorch layouts, fresh zero cache).
    ref_cache_k = jnp.zeros((max_batch_size, max_seq_len, n_kv_heads, head_dim), jnp.float32)
    ref_cache_v = jnp.zeros((max_batch_size, max_seq_len, n_kv_heads, head_dim), jnp.float32)
    ref = _reference_forward(params, ref_cache_k, ref_cache_v, x, start_pos,
                             freqs_complex, n_heads_q, n_kv_heads, head_dim)

    # Pallas path: prepared weights, native-layout bf16 KV cache, donated buffers.
    params_t = prepare_params(params)
    cache_k = jnp.zeros((max_batch_size, n_kv_heads, max_seq_len, head_dim), jnp.bfloat16)
    cache_v = jnp.zeros((max_batch_size, n_kv_heads, max_seq_len, head_dim), jnp.bfloat16)

    forward = jax.jit(self_attention_forward,
                      static_argnums=(4, 6, 7, 8),
                      donate_argnums=(1, 2))
    out, new_cache_k, new_cache_v = forward(
        params_t, cache_k, cache_v, x, start_pos, freqs_complex,
        n_heads_q, n_kv_heads, head_dim)
    jax.block_until_ready(out)

    assert out.shape == (batch, seq_len, dim)
    assert out.dtype == jnp.float32
    assert new_cache_k.shape == (max_batch_size, n_kv_heads, max_seq_len, head_dim)

    err = float(jnp.max(jnp.abs(out - ref)))
    assert err < 2e-2, f"kernel/reference mismatch: max abs err {err}"

    print("KERNEL_OK")
</pallas_src>

<mosaic_0001>
module attributes {stable_mosaic.version = 11 : i64} {
  func.func @_linear_kernel(%arg0: i32, %arg1: i32, %arg2: i32, %arg3: memref<16x32xbf16, #tpu.memory_space<vmem>>, %arg4: memref<32x32xbf16, #tpu.memory_space<vmem>>, %arg5: memref<16x32xbf16, #tpu.memory_space<vmem>>, %arg6: memref<16x32xf32, #tpu.memory_space<vmem>>) attributes {dimension_semantics = [#tpu.dimension_semantics<parallel>, #tpu.dimension_semantics<parallel>, #tpu.dimension_semantics<arbitrary>], iteration_bounds = array<i64: 1, 1, 1>, scalar_prefetch = 0 : i64, scratch_operands = 1 : i64, tpu.core_type = #tpu.core_type<tc>, window_params = [{transform_indices = @transform_0, window_bounds = array<i64: 16, 32>}, {transform_indices = @transform_1, window_bounds = array<i64: 32, 32>}, {transform_indices = @transform_2, window_bounds = array<i64: 16, 32>}]} {
    %c0_i32 = arith.constant 0 : i32
    %0 = arith.cmpi eq, %arg2, %c0_i32 : i32
    %1 = arith.extui %0 : i1 to i32
    %c0_i32_0 = arith.constant 0 : i32
    %2 = arith.cmpi ne, %1, %c0_i32_0 : i32
    scf.if %2 {
      %cst_10 = arith.constant 0.000000e+00 : f32
      %12 = vector.broadcast %cst_10 : f32 to vector<16x32xf32>
      %c0_11 = arith.constant 0 : index
      %c0_12 = arith.constant 0 : index
      %13 = vector.load %arg6[%c0_11, %c0_12] : memref<16x32xf32, #tpu.memory_space<vmem>>, vector<16x32xf32>
      tpu.vector_store %arg6[%c0_11, %c0_12], %12 {strides = array<i32>} : memref<16x32xf32, #tpu.memory_space<vmem>>, vector<16x32xf32>,
    } else {
    }
    %c0 = arith.constant 0 : index
    %c0_1 = arith.constant 0 : index
    %3 = vector.load %arg6[%c0, %c0_1] : memref<16x32xf32, #tpu.memory_space<vmem>>, vector<16x32xf32>
    %c0_2 = arith.constant 0 : index
    %c0_3 = arith.constant 0 : index
    %4 = vector.load %arg3[%c0_2, %c0_3] : memref<16x32xbf16, #tpu.memory_space<vmem>>, vector<16x32xbf16>
    %c0_4 = arith.constant 0 : index
    %c0_5 = arith.constant 0 : index
    %5 = vector.load %arg4[%c0_4, %c0_5] : memref<32x32xbf16, #tpu.memory_space<vmem>>, vector<32x32xbf16>
    %cst = arith.constant dense<0.000000e+00> : vector<16x32xf32>
    %6 = tpu.matmul %4, %5, %cst {dimension_numbers = #tpu.dot_dimension_numbers<[1], [0], [0], [1], [0, 0, 1, 1], [], []>} : vector<16x32xbf16>, vector<32x32xbf16>, vector<16x32xf32> -> vector<16x32xf32>
    %7 = arith.addf %3, %6 : vector<16x32xf32>
    %c0_6 = arith.constant 0 : index
    %c0_7 = arith.constant 0 : index
    %8 = vector.load %arg6[%c0_6, %c0_7] : memref<16x32xf32, #tpu.memory_space<vmem>>, vector<16x32xf32>
    tpu.vector_store %arg6[%c0_6, %c0_7], %7 {strides = array<i32>} : memref<16x32xf32, #tpu.memory_space<vmem>>, vector<16x32xf32>,
    %c0_i32_8 = arith.constant 0 : i32
    %9 = arith.cmpi eq, %arg2, %c0_i32_8 : i32
    %10 = arith.extui %9 : i1 to i32
    %c0_i32_9 = arith.constant 0 : i32
    %11 = arith.cmpi ne, %10, %c0_i32_9 : i32
    scf.if %11 {
      %c0_10 = arith.constant 0 : index
      %c0_11 = arith.constant 0 : index
      %12 = vector.load %arg6[%c0_10, %c0_11] : memref<16x32xf32, #tpu.memory_space<vmem>>, vector<16x32xf32>
      %13 = arith.truncf %12 : vector<16x32xf32> to vector<16x32xbf16>
      %c0_12 = arith.constant 0 : index
      %c0_13 = arith.constant 0 : index
      %14 = vector.load %arg5[%c0_12, %c0_13] : memref<16x32xbf16, #tpu.memory_space<vmem>>, vector<16x32xbf16>
      tpu.vector_store %arg5[%c0_12, %c0_13], %13 {strides = array<i32>} : memref<16x32xbf16, #tpu.memory_space<vmem>>, vector<16x32xbf16>,
    } else {
    }
    return
  }
  func.func @transform_0(%arg0: i32, %arg1: i32, %arg2: i32) -> (i32, i32) {
    %c0_i32 = arith.constant 0 : i32
    return %arg0, %arg2 : i32, i32
  }
  func.func @transform_1(%arg0: i32, %arg1: i32, %arg2: i32) -> (i32, i32) {
    %c0_i32 = arith.constant 0 : i32
    return %arg2, %arg1 : i32, i32
  }
  func.func @transform_2(%arg0: i32, %arg1: i32, %arg2: i32) -> (i32, i32) {
    %c0_i32 = arith.constant 0 : i32
    return %arg0, %arg1 : i32, i32
  }
}

module attributes {stable_mosaic.version = 11 : i64} {
  func.func @_linear_kernel(%arg0: i32, %arg1: i32, %arg2: i32, %arg3: memref<16x32xbf16, #tpu.memory_space<vmem>>, %arg4: memref<32x16xbf16, #tpu.memory_space<vmem>>, %arg5: memref<16x16xbf16, #tpu.memory_space<vmem>>, %arg6: memref<16x16xf32, #tpu.memory_space<vmem>>) attributes {dimension_semantics = [#tpu.dimension_semantics<parallel>, #tpu.dimension_semantics<parallel>, #tpu.dimension_semantics<arbitrary>], iteration_bounds = array<i64: 1, 1, 1>, scalar_prefetch = 0 : i64, scratch_operands = 1 : i64, tpu.core_type = #tpu.core_type<tc>, window_params = [{transform_indices = @transform_0, window_bounds = array<i64: 16, 32>}, {transform_indices = @transform_1, window_bounds = array<i64: 32, 16>}, {transform_indices = @transform_2, window_bounds = array<i64: 16, 16>}]} {
    %c0_i32 = arith.constant 0 : i32
    %0 = arith.cmpi eq, %arg2, %c0_i32 : i32
    %1 = arith.extui %0 : i1 to i32
    %c0_i32_0 = arith.constant 0 : i32
    %2 = arith.cmpi ne, %1, %c0_i32_0 : i32
    scf.if %2 {
      %cst_10 = arith.constant 0.000000e+00 : f32
      %12 = vector.broadcast %cst_10 : f32 to vector<16x16xf32>
      %c0_11 = arith.constant 0 : index
      %c0_12 = arith.constant 0 : index
      %13 = vector.load %arg6[%c0_11, %c0_12] : memref<16x16xf32, #tpu.memory_space<vmem>>, vector<16x16xf32>
      tpu.vector_store %arg6[%c0_11, %c0_12], %12 {strides = array<i32>} : memref<16x16xf32, #tpu.memory_space<vmem>>, vector<16x16xf32>,
    } else {
    }
    %c0 = arith.constant 0 : index
    %c0_1 = arith.constant 0 : index
    %3 = vector.load %arg6[%c0, %c0_1] : memref<16x16xf32, #tpu.memory_space<vmem>>, vector<16x16xf32>
    %c0_2 = arith.constant 0 : index
    %c0_3 = arith.constant 0 : index
    %4 = vector.load %arg3[%c0_2, %c0_3] : memref<16x32xbf16, #tpu.memory_space<vmem>>, vector<16x32xbf16>
    %c0_4 = arith.constant 0 : index
    %c0_5 = arith.constant 0 : index
    %5 = vector.load %arg4[%c0_4, %c0_5] : memref<32x16xbf16, #tpu.memory_space<vmem>>, vector<32x16xbf16>
    %cst = arith.constant dense<0.000000e+00> : vector<16x16xf32>
    %6 = tpu.matmul %4, %5, %cst {dimension_numbers = #tpu.dot_dimension_numbers<[1], [0], [0], [1], [0, 0, 1, 1], [], []>} : vector<16x32xbf16>, vector<32x16xbf16>, vector<16x16xf32> -> vector<16x16xf32>
    %7 = arith.addf %3, %6 : vector<16x16xf32>
    %c0_6 = arith.constant 0 : index
    %c0_7 = arith.constant 0 : index
    %8 = vector.load %arg6[%c0_6, %c0_7] : memref<16x16xf32, #tpu.memory_space<vmem>>, vector<16x16xf32>
    tpu.vector_store %arg6[%c0_6, %c0_7], %7 {strides = array<i32>} : memref<16x16xf32, #tpu.memory_space<vmem>>, vector<16x16xf32>,
    %c0_i32_8 = arith.constant 0 : i32
    %9 = arith.cmpi eq, %arg2, %c0_i32_8 : i32
    %10 = arith.extui %9 : i1 to i32
    %c0_i32_9 = arith.constant 0 : i32
    %11 = arith.cmpi ne, %10, %c0_i32_9 : i32
    scf.if %11 {
      %c0_10 = arith.constant 0 : index
      %c0_11 = arith.constant 0 : index
      %12 = vector.load %arg6[%c0_10, %c0_11] : memref<16x16xf32, #tpu.memory_space<vmem>>, vector<16x16xf32>
      %13 = arith.truncf %12 : vector<16x16xf32> to vector<16x16xbf16>
      %c0_12 = arith.constant 0 : index
      %c0_13 = arith.constant 0 : index
      %14 = vector.load %arg5[%c0_12, %c0_13] : memref<16x16xbf16, #tpu.memory_space<vmem>>, vector<16x16xbf16>
      tpu.vector_store %arg5[%c0_12, %c0_13], %13 {strides = array<i32>} : memref<16x16xbf16, #tpu.memory_space<vmem>>, vector<16x16xbf16>,
    } else {
    }
    return
  }
  func.func @transform_0(%arg0: i32, %arg1: i32, %arg2: i32) -> (i32, i32) {
    %c0_i32 = arith.constant 0 : i32
    return %arg0, %arg2 : i32, i32
  }
  func.func @transform_1(%arg0: i32, %arg1: i32, %arg2: i32) -> (i32, i32) {
    %c0_i32 = arith.constant 0 : i32
    return %arg2, %arg1 : i32, i32
  }
  func.func @transform_2(%arg0: i32, %arg1: i32, %arg2: i32) -> (i32, i32) {
    %c0_i32 = arith.constant 0 : i32
    return %arg0, %arg1 : i32, i32
  }
}

module attributes {stable_mosaic.version = 11 : i64} {
  func.func @_flash_attn_kernel(%arg0: i32, %arg1: i32, %arg2: i32, %arg3: i32, %arg4: memref<1x1x16x8xbf16, #tpu.memory_space<vmem>>, %arg5: memref<1x1x16x8xbf16, #tpu.memory_space<vmem>>, %arg6: memref<1x1x16x8xbf16, #tpu.memory_space<vmem>>, %arg7: memref<1x1x16x8xbf16, #tpu.memory_space<vmem>>, %arg8: memref<16x1xf32, #tpu.memory_space<vmem>>, %arg9: memref<16x1xf32, #tpu.memory_space<vmem>>, %arg10: memref<16x8xf32, #tpu.memory_space<vmem>>) attributes {dimension_semantics = [#tpu.dimension_semantics<parallel>, #tpu.dimension_semantics<parallel>, #tpu.dimension_semantics<parallel>, #tpu.dimension_semantics<arbitrary>], iteration_bounds = array<i64: 2, 2, 1, 1>, scalar_prefetch = 0 : i64, scratch_operands = 3 : i64, tpu.core_type = #tpu.core_type<tc>, window_params = [{transform_indices = @transform_0, window_bounds = array<i64: 1, 1, 16, 8>}, {transform_indices = @transform_1, window_bounds = array<i64: 1, 1, 16, 8>}, {transform_indices = @transform_2, window_bounds = array<i64: 1, 1, 16, 8>}, {transform_indices = @transform_3, window_bounds = array<i64: 1, 1, 16, 8>}]} {
    %c0_i32 = arith.constant 0 : i32
    %0 = arith.cmpi eq, %arg3, %c0_i32 : i32
    %1 = arith.extui %0 : i1 to i32
    %c0_i32_0 = arith.constant 0 : i32
    %2 = arith.cmpi ne, %1, %c0_i32_0 : i32
    scf.if %2 {
      %cst_31 = arith.constant 0xFF800000 : f32
      %46 = vector.broadcast %cst_31 : f32 to vector<16x1xf32>
      %c0_32 = arith.constant 0 : index
      %c0_33 = arith.constant 0 : index
      %47 = vector.load %arg8[%c0_32, %c0_33] : memref<16x1xf32, #tpu.memory_space<vmem>>, vector<16x1xf32>
      tpu.vector_store %arg8[%c0_32, %c0_33], %46 {strides = array<i32>} : memref<16x1xf32, #tpu.memory_space<vmem>>, vector<16x1xf32>,
      %cst_34 = arith.constant 0.000000e+00 : f32
      %48 = vector.broadcast %cst_34 : f32 to vector<16x1xf32>
      %c0_35 = arith.constant 0 : index
      %c0_36 = arith.constant 0 : index
      %49 = vector.load %arg9[%c0_35, %c0_36] : memref<16x1xf32, #tpu.memory_space<vmem>>, vector<16x1xf32>
      tpu.vector_store %arg9[%c0_35, %c0_36], %48 {strides = array<i32>} : memref<16x1xf32, #tpu.memory_space<vmem>>, vector<16x1xf32>,
      %cst_37 = arith.constant 0.000000e+00 : f32
      %50 = vector.broadcast %cst_37 : f32 to vector<16x8xf32>
      %c0_38 = arith.constant 0 : index
      %c0_39 = arith.constant 0 : index
      %51 = vector.load %arg10[%c0_38, %c0_39] : memref<16x8xf32, #tpu.memory_space<vmem>>, vector<16x8xf32>
      tpu.vector_store %arg10[%c0_38, %c0_39], %50 {strides = array<i32>} : memref<16x8xf32, #tpu.memory_space<vmem>>, vector<16x8xf32>,
    } else {
    }
    %c0 = arith.constant 0 : index
    %c0_1 = arith.constant 0 : index
    %c0_2 = arith.constant 0 : index
    %c0_3 = arith.constant 0 : index
    %3 = vector.load %arg4[%c0, %c0_1, %c0_2, %c0_3] : memref<1x1x16x8xbf16, #tpu.memory_space<vmem>>, vector<1x1x16x8xbf16>
    %4 = vector.shape_cast %3 : vector<1x1x16x8xbf16> to vector<16x8xbf16>
    %cst = arith.constant 3.535160e-01 : bf16
    %5 = vector.broadcast %cst : bf16 to vector<16x8xbf16>
    %6 = arith.mulf %4, %5 : vector<16x8xbf16>
    %c0_4 = arith.constant 0 : index
    %c0_5 = arith.constant 0 : index
    %c0_6 = arith.constant 0 : index
    %c0_7 = arith.constant 0 : index
    %7 = vector.load %arg5[%c0_4, %c0_5, %c0_6, %c0_7] : memref<1x1x16x8xbf16, #tpu.memory_space<vmem>>, vector<1x1x16x8xbf16>
    %8 = vector.shape_cast %7 : vector<1x1x16x8xbf16> to vector<16x8xbf16>
    %c0_8 = arith.constant 0 : index
    %c0_9 = arith.constant 0 : index
    %c0_10 = arith.constant 0 : index
    %c0_11 = arith.constant 0 : index
    %9 = vector.load %arg6[%c0_8, %c0_9, %c0_10, %c0_11] : memref<1x1x16x8xbf16, #tpu.memory_space<vmem>>, vector<1x1x16x8xbf16>
    %10 = vector.shape_cast %9 : vector<1x1x16x8xbf16> to vector<16x8xbf16>
    %cst_12 = arith.constant dense<0.000000e+00> : vector<16x16xf32>
    %11 = tpu.matmul %6, %8, %cst_12 {dimension_numbers = #tpu.dot_dimension_numbers<[1], [1], [0], [0], [0, 0, 1, 0], [], []>} : vector<16x8xbf16>, vector<16x8xbf16>, vector<16x16xf32> -> vector<16x16xf32>
    %12 = tpu.iota {dimensions = array<i32: 1>} : vector<16x16xi32>
    %c16_i32 = arith.constant 16 : i32
    %13 = arith.muli %arg3, %c16_i32 : i32
    %14 = vector.broadcast %13 : i32 to vector<16x16xi32>
    %15 = arith.addi %12, %14 : vector<16x16xi32>
    %c12_i32 = arith.constant 12 : i32
    %16 = vector.broadcast %c12_i32 : i32 to vector<16x16xi32>
    %17 = arith.cmpi slt, %15, %16 : vector<16x16xi32>
    %cst_13 = arith.constant 0xFF800000 : f32
    %18 = vector.broadcast %cst_13 : f32 to vector<16x16xf32>
    %19 = arith.select %17, %11, %18 : vector<16x16xi1>, vector<16x16xf32>
    %c0_14 = arith.constant 0 : index
    %c0_15 = arith.constant 0 : index
    %20 = vector.load %arg8[%c0_14, %c0_15] : memref<16x1xf32, #tpu.memory_space<vmem>>, vector<16x1xf32>
    %cst_16 = arith.constant dense<0xFF800000> : vector<16xf32>
    %21 = vector.multi_reduction <maximumf>, %19, %cst_16 [1] : vector<16x16xf32> to vector<16xf32>
    %22 = vector.shape_cast %21 : vector<16xf32> to vector<16x1xf32>
    %23 = arith.maximumf %20, %22 : vector<16x1xf32>
    %24 = arith.subf %20, %23 : vector<16x1xf32>
    %25 = math.exp %24 : vector<16x1xf32>
    %26 = vector.broadcast %23 : vector<16x1xf32> to vector<16x16xf32>
    %27 = arith.subf %19, %26 : vector<16x16xf32>
    %28 = math.exp %27 : vector<16x16xf32>
    %c0_17 = arith.constant 0 : index
    %c0_18 = arith.constant 0 : index
    %29 = vector.load %arg9[%c0_17, %c0_18] : memref<16x1xf32, #tpu.memory_space<vmem>>, vector<16x1xf32>
    %30 = arith.mulf %25, %29 : vector<16x1xf32>
    %cst_19 = arith.constant dense<0.000000e+00> : vector<16xf32>
    %31 = vector.multi_reduction <add>, %28, %cst_19 [1] : vector<16x16xf32> to vector<16xf32>
    %32 = vector.shape_cast %31 : vector<16xf32> to vector<16x1xf32>
    %33 = arith.addf %30, %32 : vector<16x1xf32>
    %c0_20 = arith.constant 0 : index
    %c0_21 = arith.constant 0 : index
    %34 = vector.load %arg9[%c0_20, %c0_21] : memref<16x1xf32, #tpu.memory_space<vmem>>, vector<16x1xf32>
    tpu.vector_store %arg9[%c0_20, %c0_21], %33 {strides = array<i32>} : memref<16x1xf32, #tpu.memory_space<vmem>>, vector<16x1xf32>,
    %c0_22 = arith.constant 0 : index
    %c0_23 = arith.constant 0 : index
    %35 = vector.load %arg10[%c0_22, %c0_23] : memref<16x8xf32, #tpu.memory_space<vmem>>, vector<16x8xf32>
    %36 = vector.broadcast %25 : vector<16x1xf32> to vector<16x8xf32>
    %37 = arith.mulf %36, %35 : vector<16x8xf32>
    %38 = arith.truncf %28 : vector<16x16xf32> to vector<16x16xbf16>
    %cst_24 = arith.constant dense<0.000000e+00> : vector<16x8xf32>
    %39 = tpu.matmul %38, %10, %cst_24 {dimension_numbers = #tpu.dot_dimension_numbers<[1], [0], [0], [1], [0, 0, 1, 1], [], []>} : vector<16x16xbf16>, vector<16x8xbf16>, vector<16x8xf32> -> vector<16x8xf32>
    %40 = arith.addf %37, %39 : vector<16x8xf32>
    %c0_25 = arith.constant 0 : index
    %c0_26 = arith.constant 0 : index
    %41 = vector.load %arg10[%c0_25, %c0_26] : memref<16x8xf32, #tpu.memory_space<vmem>>, vector<16x8xf32>
    tpu.vector_store %arg10[%c0_25, %c0_26], %40 {strides = array<i32>} : memref<16x8xf32, #tpu.memory_space<vmem>>, vector<16x8xf32>,
    %c0_27 = arith.constant 0 : index
    %c0_28 = arith.constant 0 : index
    %42 = vector.load %arg8[%c0_27, %c0_28] : memref<16x1xf32, #tpu.memory_space<vmem>>, vector<16x1xf32>
    tpu.vector_store %arg8[%c0_27, %c0_28], %23 {strides = array<i32>} : memref<16x1xf32, #tpu.memory_space<vmem>>, vector<16x1xf32>,
    %c0_i32_29 = arith.constant 0 : i32
    %43 = arith.cmpi eq, %arg3, %c0_i32_29 : i32
    %44 = arith.extui %43 : i1 to i32
    %c0_i32_30 = arith.constant 0 : i32
    %45 = arith.cmpi ne, %44, %c0_i32_30 : i32
    scf.if %45 {
      %c0_31 = arith.constant 0 : index
      %c0_32 = arith.constant 0 : index
      %46 = vector.load %arg9[%c0_31, %c0_32] : memref<16x1xf32, #tpu.memory_space<vmem>>, vector<16x1xf32>
      %47 = tpu.reciprocal %46 {approx = true} : vector<16x1xf32> -> vector<16x1xf32>
      %c0_33 = arith.constant 0 : index
      %c0_34 = arith.constant 0 : index
      %48 = vector.load %arg10[%c0_33, %c0_34] : memref<16x8xf32, #tpu.memory_space<vmem>>, vector<16x8xf32>
      %49 = vector.broadcast %47 : vector<16x1xf32> to vector<16x8xf32>
      %50 = arith.mulf %48, %49 : vector<16x8xf32>
      %51 = arith.truncf %50 : vector<16x8xf32> to vector<16x8xbf16>
      %c0_35 = arith.constant 0 : index
      %c0_36 = arith.constant 0 : index
      %c0_37 = arith.constant 0 : index
      %c0_38 = arith.constant 0 : index
      %52 = vector.load %arg7[%c0_35, %c0_36, %c0_37, %c0_38] : memref<1x1x16x8xbf16, #tpu.memory_space<vmem>>, vector<1x1x16x8xbf16>
      %53 = vector.shape_cast %52 : vector<1x1x16x8xbf16> to vector<16x8xbf16>
      %54 = vector.shape_cast %51 : vector<16x8xbf16> to vector<1x1x16x8xbf16>
      tpu.vector_store %arg7[%c0_35, %c0_36, %c0_37, %c0_38], %54 {strides = array<i32>} : memref<1x1x16x8xbf16, #tpu.memory_space<vmem>>, vector<1x1x16x8xbf16>,
    } else {
    }
    return
  }
  func.func @transform_0(%arg0: i32, %arg1: i32, %arg2: i32, %arg3: i32) -> (i32, i32, i32, i32) {
    %c0_i32 = arith.constant 0 : i32
    %c0_i32_0 = arith.constant 0 : i32
    return %arg0, %arg1, %arg2, %c0_i32 : i32, i32, i32, i32
  }
  func.func @transform_1(%arg0: i32, %arg1: i32, %arg2: i32, %arg3: i32) -> (i32, i32, i32, i32) {
    %c0_i32 = arith.constant 0 : i32
    %c0_i32_0 = arith.constant 0 : i32
    return %arg0, %arg1, %arg3, %c0_i32 : i32, i32, i32, i32
  }
  func.func @transform_2(%arg0: i32, %arg1: i32, %arg2: i32, %arg3: i32) -> (i32, i32, i32, i32) {
    %c0_i32 = arith.constant 0 : i32
    %c0_i32_0 = arith.constant 0 : i32
    return %arg0, %arg1, %arg3, %c0_i32 : i32, i32, i32, i32
  }
  func.func @transform_3(%arg0: i32, %arg1: i32, %arg2: i32, %arg3: i32) -> (i32, i32, i32, i32) {
    %c0_i32 = arith.constant 0 : i32
    %c0_i32_0 = arith.constant 0 : i32
    return %arg0, %arg1, %arg2, %c0_i32 : i32, i32, i32, i32
  }
}

module attributes {stable_mosaic.version = 11 : i64} {
  func.func @_linear_kernel(%arg0: i32, %arg1: i32, %arg2: i32, %arg3: memref<16x32xbf16, #tpu.memory_space<vmem>>, %arg4: memref<32x32xbf16, #tpu.memory_space<vmem>>, %arg5: memref<16x32xf32, #tpu.memory_space<vmem>>, %arg6: memref<16x32xf32, #tpu.memory_space<vmem>>) attributes {dimension_semantics = [#tpu.dimension_semantics<parallel>, #tpu.dimension_semantics<parallel>, #tpu.dimension_semantics<arbitrary>], iteration_bounds = array<i64: 1, 1, 1>, scalar_prefetch = 0 : i64, scratch_operands = 1 : i64, tpu.core_type = #tpu.core_type<tc>, window_params = [{transform_indices = @transform_0, window_bounds = array<i64: 16, 32>}, {transform_indices = @transform_1, window_bounds = array<i64: 32, 32>}, {transform_indices = @transform_2, window_bounds = array<i64: 16, 32>}]} {
    %c0_i32 = arith.constant 0 : i32
    %0 = arith.cmpi eq, %arg2, %c0_i32 : i32
    %1 = arith.extui %0 : i1 to i32
    %c0_i32_0 = arith.constant 0 : i32
    %2 = arith.cmpi ne, %1, %c0_i32_0 : i32
    scf.if %2 {
      %cst_10 = arith.constant 0.000000e+00 : f32
      %12 = vector.broadcast %cst_10 : f32 to vector<16x32xf32>
      %c0_11 = arith.constant 0 : index
      %c0_12 = arith.constant 0 : index
      %13 = vector.load %arg6[%c0_11, %c0_12] : memref<16x32xf32, #tpu.memory_space<vmem>>, vector<16x32xf32>
      tpu.vector_store %arg6[%c0_11, %c0_12], %12 {strides = array<i32>} : memref<16x32xf32, #tpu.memory_space<vmem>>, vector<16x32xf32>,
    } else {
    }
    %c0 = arith.constant 0 : index
    %c0_1 = arith.constant 0 : index
    %3 = vector.load %arg6[%c0, %c0_1] : memref<16x32xf32, #tpu.memory_space<vmem>>, vector<16x32xf32>
    %c0_2 = arith.constant 0 : index
    %c0_3 = arith.constant 0 : index
    %4 = vector.load %arg3[%c0_2, %c0_3] : memref<16x32xbf16, #tpu.memory_space<vmem>>, vector<16x32xbf16>
    %c0_4 = arith.constant 0 : index
    %c0_5 = arith.constant 0 : index
    %5 = vector.load %arg4[%c0_4, %c0_5] : memref<32x32xbf16, #tpu.memory_space<vmem>>, vector<32x32xbf16>
    %cst = arith.constant dense<0.000000e+00> : vector<16x32xf32>
    %6 = tpu.matmul %4, %5, %cst {dimension_numbers = #tpu.dot_dimension_numbers<[1], [0], [0], [1], [0, 0, 1, 1], [], []>} : vector<16x32xbf16>, vector<32x32xbf16>, vector<16x32xf32> -> vector<16x32xf32>
    %7 = arith.addf %3, %6 : vector<16x32xf32>
    %c0_6 = arith.constant 0 : index
    %c0_7 = arith.constant 0 : index
    %8 = vector.load %arg6[%c0_6, %c0_7] : memref<16x32xf32, #tpu.memory_space<vmem>>, vector<16x32xf32>
    tpu.vector_store %arg6[%c0_6, %c0_7], %7 {strides = array<i32>} : memref<16x32xf32, #tpu.memory_space<vmem>>, vector<16x32xf32>,
    %c0_i32_8 = arith.constant 0 : i32
    %9 = arith.cmpi eq, %arg2, %c0_i32_8 : i32
    %10 = arith.extui %9 : i1 to i32
    %c0_i32_9 = arith.constant 0 : i32
    %11 = arith.cmpi ne, %10, %c0_i32_9 : i32
    scf.if %11 {
      %c0_10 = arith.constant 0 : index
      %c0_11 = arith.constant 0 : index
      %12 = vector.load %arg6[%c0_10, %c0_11] : memref<16x32xf32, #tpu.memory_space<vmem>>, vector<16x32xf32>
      %c0_12 = arith.constant 0 : index
      %c0_13 = arith.constant 0 : index
      %13 = vector.load %arg5[%c0_12, %c0_13] : memref<16x32xf32, #tpu.memory_space<vmem>>, vector<16x32xf32>
      tpu.vector_store %arg5[%c0_12, %c0_13], %12 {strides = array<i32>} : memref<16x32xf32, #tpu.memory_space<vmem>>, vector<16x32xf32>,
    } else {
    }
    return
  }
  func.func @transform_0(%arg0: i32, %arg1: i32, %arg2: i32) -> (i32, i32) {
    %c0_i32 = arith.constant 0 : i32
    return %arg0, %arg2 : i32, i32
  }
  func.func @transform_1(%arg0: i32, %arg1: i32, %arg2: i32) -> (i32, i32) {
    %c0_i32 = arith.constant 0 : i32
    return %arg2, %arg1 : i32, i32
  }
  func.func @transform_2(%arg0: i32, %arg1: i32, %arg2: i32) -> (i32, i32) {
    %c0_i32 = arith.constant 0 : i32
    return %arg0, %arg1 : i32, i32
  }
}

</mosaic_0001>

<bundles_post_ra>
// kernel: custom-call.1
= control target key start
LH: loop header
LB: loop body
LE: loop exit
PB: predicated region body
PF: predicated region fallthrough
CT: control target
= control target key end

     0   :  { %s56_s0 = inlined_call_operand.hbm [shape: c64[8,4], index: 0, kind: input, shape index: {}]   ;;  %s57_s1 = inlined_call_operand.vmem [shape: f32[8,4], index: 1, kind: output, shape index: {}]  }
   0x1   :  { %s2_s8 = scalar_lea.hbm %s56_s0, 4 }
   0x2   :  { %3 = vsyncpa [#allocation0], 0  ;;  %s5_s9 = sshll.u32 %s2_s8, 4  ;;  %s7_s12 = sshll.u32 %s57_s1, 4  ;;  %s6_s9 = int_to_ptr.hbm [resolvable:$true] %s5_s9  ;;  %s8_s12 = int_to_ptr.vmem [resolvable:$true] %s7_s12 }
   0x3   :  { %10 = dma.hbm_to_vmem [thread:$0]  %s6_s9, 64, %s8_s12, [#allocation0] }
   0x4   :  { %38 = dma.done.wait [#allocation0], 64  }
   0x5   :  { %39 = vsyncadd [#allocation0], 4294967232 }
   0x6   :  { %13 = vsyncpa [#allocation0], 1 }

// kernel: custom-call
= control target key start
LH: loop header
LB: loop body
LE: loop exit
PB: predicated region body
PF: predicated region fallthrough
CT: control target
= control target key end

     0   :  { %2 = vsyncpa [#allocation0], 0  ;;  %s55_s0 = inlined_call_operand.hbm [shape: c64[8,4], index: 0, kind: input, shape index: {}]   ;;  %s56_s1 = inlined_call_operand.vmem [shape: f32[8,4], index: 1, kind: output, shape index: {}]  }
   0x1   :  { %s4_s8 = sshll.u32 %s55_s0, 4  ;;  %s6_s11 = sshll.u32 %s56_s1, 4  ;;  %s5_s8 = int_to_ptr.hbm [resolvable:$true] %s4_s8  ;;  %s7_s11 = int_to_ptr.vmem [resolvable:$true] %s6_s11 }
   0x2   :  { %9 = dma.hbm_to_vmem [thread:$0]  %s5_s8, 64, %s7_s11, [#allocation0] }
   0x3   :  { %37 = dma.done.wait [#allocation0], 64  }
   0x4   :  { %38 = vsyncadd [#allocation0], 4294967232 }
   0x5   :  { %12 = vsyncpa [#allocation0], 1 }

// kernel: self_attention_forward.5
= control target key start
LH: loop header
LB: loop body
LE: loop exit
PB: predicated region body
PF: predicated region fallthrough
CT: control target
= control target key end

     0   :  { %vm16_vm0 = vcmask 261120   ;;  %v97_v1 = vmov 0.0   ;;  %vm73_vm1 = vcmask 257024   ;;  %s133_s1 = inlined_call_operand.vmem [shape: bf16[32,32], index: 1, kind: input, shape index: {}]   ;;  %s134_s0 = inlined_call_operand.vmem [shape: bf16[16,32], index: 0, kind: input, shape index: {}]   ;;  %s135_s2 = inlined_call_operand.vmem [shape: bf16[16,32], index: 2, kind: output, shape index: {}]  }
   0x1   :  { %v95_v0 = vld [vmem:[%s133_s1 + $0x8] sm:$0xff]  ;;  %17 = vst.msk [vmem:[#allocation2] sm:$0xff] %vm16_vm0, %v97_v1  ;;  %v94_v2 = vld [vmem:[%s133_s1] sm:$0xff] }
   0x2   :  { %18 = vst.msk [vmem:[#allocation2 + $0x8] sm:$0xff] %vm16_vm0, %v97_v1  ;;  %54 = vmatpush.bf16.msra.mxu0 %v95_v0  ;;  %v93_v3 = vld [vmem:[%s134_s0] sm:$0xff] }
   0x6   :  { %55 = vmatpush.bf16.msra.mxu0 %v94_v2 }
   0x8   :  { %v19_v4 = vld [vmem:[#allocation2] sm:$0xff] }
   0x9   :  { %92 = vmatmul.msk.bf16.vlgmr.msra.gmra.mxu0 %vm16_vm0, %v93_v3  ;;  %v20_v7 = vld [vmem:[#allocation2 + $0x8] sm:$0xff] }
  0x86   :  { %v57_v5 = vpop.f32.mrf.mxu0 }
  0x87   :  { %v62_v6 = vadd.f32 %v57_v5, %v19_v4 }
  0x89   :  { %64 = vst.msk [vmem:[#allocation2] sm:$0xff] %vm16_vm0, %v62_v6 }
  0x8e   :  { %v59_v8 = vpop.f32.mrf.mxu0 }
  0x8f   :  { %v63_v9 = vadd.f32 %v59_v8, %v20_v7 }
  0x90   :  { %v69_v10 = vld [vmem:[#allocation2] sm:$0xff] }
  0x91   :  { %v71_v11 = vpack.c.bf16 %v69_v10, %v69_v10  ;;  %65 = vst.msk [vmem:[#allocation2 + $0x8] sm:$0xff] %vm16_vm0, %v63_v9 }
  0x93   :  { %74 = vst.msk [vmem:[%s135_s2] sm:$0xf] %vm73_vm1, %v71_v11 }
  0x98   :  { %v70_v12 = vld [vmem:[#allocation2 + $0x8] sm:$0xff] }
  0x99   :  { %v72_v13 = vpack.c.bf16 %v70_v12, %v70_v12 }
  0x9b   :  { %75 = vst.msk [vmem:[%s135_s2 + $0x4] sm:$0xf] %vm73_vm1, %v72_v13 }

// kernel: self_attention_forward.6
= control target key start
LH: loop header
LB: loop body
LE: loop exit
PB: predicated region body
PF: predicated region fallthrough
CT: control target
= control target key end

     0   :  { %vm16_vm0 = vcmask 130048   ;;  %v98_v1 = vmov 0.0   ;;  %vm44_vm1 = vcmask 261120   ;;  %vm74_vm2 = vcmask 125952   ;;  %s133_s1 = inlined_call_operand.vmem [shape: bf16[32,16], index: 1, kind: input, shape index: {}]   ;;  %s134_s0 = inlined_call_operand.vmem [shape: bf16[16,32], index: 0, kind: input, shape index: {}]   ;;  %s135_s2 = inlined_call_operand.vmem [shape: bf16[16,16], index: 2, kind: output, shape index: {}]  }
   0x1   :  { %v96_v0 = vld [vmem:[%s133_s1 + $0x8] sm:$0xff]  ;;  %17 = vst.msk [vmem:[#allocation2] sm:$0xff] %vm16_vm0, %v98_v1  ;;  %v95_v2 = vld [vmem:[%s133_s1] sm:$0xff] }
   0x2   :  { %18 = vst.msk [vmem:[#allocation2 + $0x8] sm:$0xff] %vm16_vm0, %v98_v1  ;;  %54 = vmatpush.bf16.msra.mxu0 %v96_v0  ;;  %v94_v3 = vld [vmem:[%s134_s0] sm:$0xff] }
   0x6   :  { %55 = vmatpush.bf16.msra.mxu0 %v95_v2 }
   0x8   :  { %v19_v4 = vld [vmem:[#allocation2] sm:$0xff] }
   0x9   :  { %93 = vmatmul.msk.bf16.vlgmr.msra.gmra.mxu0 %vm44_vm1, %v94_v3  ;;  %v20_v7 = vld [vmem:[#allocation2 + $0x8] sm:$0xff] }
  0x86   :  { %v57_v5 = vpop.f32.mrf.mxu0 }
  0x87   :  { %v62_v6 = vadd.f32 %v57_v5, %v19_v4 }
  0x89   :  { %65 = vst.msk [vmem:[#allocation2] sm:$0xff] %vm16_vm0, %v62_v6 }
  0x8e   :  { %v59_v8 = vpop.f32.mrf.mxu0 }
  0x8f   :  { %v63_v9 = vadd.f32 %v59_v8, %v20_v7 }
  0x90   :  { %v70_v10 = vld [vmem:[#allocation2] sm:$0xff] }
  0x91   :  { %v72_v11 = vpack.c.bf16 %v70_v10, %v70_v10  ;;  %66 = vst.msk [vmem:[#allocation2 + $0x8] sm:$0xff] %vm16_vm0, %v63_v9 }
  0x93   :  { %75 = vst.msk [vmem:[%s135_s2] sm:$0xf] %vm74_vm2, %v72_v11 }
  0x98   :  { %v71_v12 = vld [vmem:[#allocation2 + $0x8] sm:$0xff] }
  0x99   :  { %v73_v13 = vpack.c.bf16 %v71_v12, %v71_v12 }
  0x9b   :  { %76 = vst.msk [vmem:[%s135_s2 + $0x4] sm:$0xf] %vm74_vm2, %v73_v13 }

// kernel: self_attention_forward.9
= control target key start
LH: loop header
LB: loop body
LE: loop exit
PB: predicated region body
PF: predicated region fallthrough
CT: control target
= control target key end

     0   :  { %vm17_vm0 = vcmask 261120   ;;  %v138_v1 = vmov 0.0   ;;  %s176_s0 = inlined_call_operand.vmem [shape: bf16[16,32], index: 0, kind: input, shape index: {}]   ;;  %s177_s1 = inlined_call_operand.vmem [shape: bf16[32,32], index: 1, kind: input, shape index: {}]   ;;  %s178_s2 = inlined_call_operand.hbm [shape: f32[16,32], index: 2, kind: output, shape index: {}]  }
   0x1   :  { %v107_v0 = vld [vmem:[%s177_s1 + $0x8] sm:$0xff]  ;;  %18 = vst.msk [vmem:[#allocation2] sm:$0xff] %vm17_vm0, %v138_v1 }
   0x2   :  { %7 = vsyncpa [#allocation4], 0  ;;  %55 = vmatpush.bf16.msra.mxu0 %v107_v0  ;;  %v106_v2 = vld [vmem:[%s177_s1] sm:$0xff]  ;;  %19 = vst.msk [vmem:[#allocation2 + $0x8] sm:$0xff] %vm17_vm0, %v138_v1  ;;  %s139_s1 = smov [#allocation3]   ;;  %s80_s17 = sshll.u32 %s178_s2, 4  ;;  %s81_s17 = int_to_ptr.hbm [resolvable:$true] %s80_s17 }
   0x3   :  { %v105_v3 = vld [vmem:[%s176_s0] sm:$0xff]  ;;  %s78_s15 = sshll.u32 %s139_s1, 4  ;;  %s140_s18 = smov 128   ;;  %s79_s15 = int_to_ptr.vmem [resolvable:$true] %s78_s15 }
   0x4   :  { %s141_s19 = smov 8  }
   0x6   :  { %56 = vmatpush.bf16.msra.mxu0 %v106_v2 }
   0x8   :  { %v20_v4 = vld [vmem:[#allocation2] sm:$0xff] }
   0x9   :  { %104 = vmatmul.msk.bf16.vlgmr.msra.gmra.mxu0 %vm17_vm0, %v105_v3  ;;  %v21_v7 = vld [vmem:[#allocation2 + $0x8] sm:$0xff] }
  0x86   :  { %v58_v5 = vpop.f32.mrf.mxu0 }
  0x87   :  { %v63_v6 = vadd.f32 %v58_v5, %v20_v4 }
  0x89   :  { %65 = vst.msk [vmem:[#allocation2] sm:$0xff] %vm17_vm0, %v63_v6 }
  0x8e   :  { %v60_v8 = vpop.f32.mrf.mxu0 }
  0x8f   :  { %v64_v9 = vadd.f32 %v60_v8, %v21_v7 }
  0x90   :  { %v70_v10 = vld [vmem:[#allocation2] sm:$0xff] }
  0x91   :  { %66 = vst.msk [vmem:[#allocation2 + $0x8] sm:$0xff] %vm17_vm0, %v64_v9 }
  0x92   :  { %72 = vst.msk [vmem:[#allocation3] sm:$0xff] %vm17_vm0, %v70_v10 }
  0x98   :  { %v71_v11 = vld [vmem:[#allocation2 + $0x8] sm:$0xff] }
  0x99   :  { %73 = vst.msk [vmem:[#allocation3 + $0x8] sm:$0xff] %vm17_vm0, %v71_v11 }
  0x9a   :  { %86 = dma.vmem_to_hbm [thread:$0]  %s79_s15, 256, %s81_s17, [#allocation4], %s140_s18, %s140_s18, %s141_s19  }
  0x9b   :  { %136 = dma.done.wait [#allocation4], 256  }
  0x9c   :  { %137 = vsyncadd [#allocation4], 4294967040 }
  0x9d   :  { %91 = vsyncpa [#allocation4], 1 }

// kernel: self_attention_forward.8
= control target key start
LH: loop header
LB: loop body
LE: loop exit
PB: predicated region body
PF: predicated region fallthrough
CT: control target
= control target key end

     0   :  { %s846_s12 = smov 0   ;;  %s848_s13 = smov 0   ;;  %s928_s0 = inlined_call_operand.vmem [shape: bf16[2,2,16,8], index: 0, kind: input, shape index: {}]   ;;  %s929_s1 = inlined_call_operand.vmem [shape: bf16[2,2,16,8], index: 1, kind: input, shape index: {}]   ;;  %s930_s2 = inlined_call_operand.vmem [shape: bf16[2,2,16,8], index: 2, kind: input, shape index: {}]   ;;  %s931_s3 = inlined_call_operand.vmem [shape: bf16[2,2,16,8], index: 3, kind: output, shape index: {}]  }
   0x1   :  { %s850_s14 = smov 0   ;;  %s852_s15 = smov 0  }
   0x2   :  { %s854_s16 = smov 0  }
   0x3 LB: > { %s35_s17 = sadd.s32 1, %s813_s14  ;;  %s39_s18 = sadd.s32 1, %s817_s15  ;;  %s821_s16 = sphi %s854_s16, %s13_s16   ;;  %s817_s15 = sphi %s852_s15, %s935_s15   ;;  %s813_s14 = sphi %s850_s14, %s934_s14   ;;  %s809_s13 = sphi %s848_s13, %s933_s13   ;;  %s805_s12 = sphi %s846_s12, %s932_s12  }
   0x4   : > { %p37_p0 = scmp.ge.s32.totalorder %s35_s17, 2  ;;  %p694_p1 = scmp.ge.s32.totalorder %s821_s16, 1 }
   0x5   : > { %p226_p2 = scmp.lt.s32.totalorder %s821_s16, 5 }
   0x6   : > { %s937_s17 = smov (%p37_p0, %s35_s17), 0  ;;  %s939_s18 = smov (!%p37_p0, %s39_s18), %s817_s15 }
   0x7   : > { %p227_p3 = pnand %p694_p1, %p226_p2  ;;  %p41_p4 = scmp.ge.s32.totalorder %s939_s18, 2 }
   0x8   : > { %p293_p5 = scmp.lt.s32.totalorder (!%p227_p3), %s809_s13, 1  ;;  %p295_p6 = scmp.lt.s32.totalorder (!%p227_p3), %s805_s12, 1 }
   0x9   : > { %s941_s18 = smov (%p41_p4, %s939_s18), 0  ;;  %230 = sbr.rel (%p227_p3) target bundleno = 662 (0x296), region = 32 }
   0xe   : > { %vm358_vm0 = vcmask 64512   ;;  %v823_v0 = vmov 0.0   ;;  %s943_s13 = smov (!%p293_p5, %s809_s13), 1  ;;  %s945_s12 = smov (!%p295_p6, %s805_s12), 1  ;;  %vm353_vm1 = vcmask 7168   ;;  %v824_v9 = vmov -inf  }
   0xf   : > { %359 = vst.msk [vmem:[#allocation4] sm:$0xff] %vm358_vm0, %v823_v0  ;;  %s696_s19 = sshll.u32 %s943_s13, 2  ;;  %s695_s20 = sshll.u32 %s945_s12, 1  ;;  %v398_v10 = vlaneseq  ;;  %vm408_vm3 = vcmask 130048   ;;  %v825_v18 = vmov 0   ;;  %vm521_vm4 = vcmask 60416  }
  0x10   : > { %360 = vst.msk [vmem:[#allocation4 + $0x8] sm:$0xff] %vm358_vm0, %v823_v0  ;;  %s302_s21 = sadd.s32 %s696_s19, %s695_s20  ;;  %768 = vset.pattern.permute.xlu1 %v825_v18  ;;  %769 = vset.pattern.permute.xlu0 %v825_v18 }
  0x11   : > { %s878_s22 = sshll.u32 %s302_s21, 2  ;;  %354 = vst.msk [vmem:[#allocation2] sm:$0xff] %vm353_vm1, %v824_v9  ;;  %v399_v11 = vand.u32 127, %v398_v10  ;;  %770 = vset.pattern.permute.xlu2 %v825_v18 }
  0x12   : > { %s318_s25 = scalar_lea.vmem %s929_s1, %s878_s22  ;;  %s304_s28 = scalar_lea.vmem %s928_s0, %s878_s22  ;;  %355 = vst.msk [vmem:[#allocation2 + $0x8] sm:$0xff] %vm353_vm1, %v824_v9 }
  0x13   : > { %v719_v1 = vld [vmem:[%s318_s25] sm:$0xff]  ;;  %356 = vst.msk [vmem:[#allocation3] sm:$0xff] %vm353_vm1, %v823_v0  ;;  %vm403_vm2 = vcmp.lt.s32.totalorder %v399_v11, 12  ;;  %s332_s4 = scalar_lea.vmem %s930_s2, %s878_s22  ;;  %s346_s7 = scalar_lea.vmem %s931_s3, %s878_s22 }
  0x14   : > { %v722_v2 = vld [vmem:[%s304_s28] sm:$0xff]   ;;  %v382_v5 = vsel %vm358_vm0, %v719_v1, 0  ;;  %357 = vst.msk [vmem:[#allocation3 + $0x8] sm:$0xff] %vm353_vm1, %v823_v0 }
  0x15   : > { %v723_v3 = vunpack.c.l.bf16 %v722_v2  ;;  %v724_v4 = vunpack.c.h.bf16 %v722_v2  ;;  %391 = vmatpush.bf16.xpose.msra.mxu0 %v382_v5  ;;  %v720_v31 = vld [vmem:[%s332_s4] sm:$0xff] }
  0x16   : > { %485 = vmatpush.bf16.msra.mxu1 %v720_v31  ;;  %v454_v52 = vld [vmem:[#allocation4] sm:$0xff] }
  0x17   : > { %v365_v6 = vmul.f32 0.35351563, %v723_v3  ;;  %v366_v7 = vmul.f32 0.35351563, %v724_v4  ;;  %v455_v59 = vld [vmem:[#allocation4 + $0x8] sm:$0xff] }
  0x18   : > { %v406_v19 = vld [vmem:[#allocation2] sm:$0xff] }
  0x19   : > { %v367_v8 = vpack.c.bf16 %v366_v7, %v365_v6  ;;  %v407_v24 = vld [vmem:[#allocation2 + $0x8] sm:$0xff] }
  0x1a   : > { %v439_v43 = vld [vmem:[#allocation3] sm:$0xff] }
  0x1b   : > { %v440_v47 = vld [vmem:[#allocation3 + $0x8] sm:$0xff] }
  0x1c   : > { %711 = vmatmul.msk.bf16.vlgmr.msra.gmra.mxu0 %vm358_vm0, %v367_v8 }
  0x99   : > { %v393_v12 = vpop.f32.mrf.mxu0 }
  0x9a   : > { %v404_v13 = vsel %vm403_vm2, %v393_v12, -inf }
  0x9b   : > { %v409_v14 = vsel %vm408_vm3, %v404_v13, -inf }
  0x9c   : > { %410 = vmax.xlane.f32.xlu0 %v409_v14 }
  0xa1   : > { %v395_v15 = vpop.f32.mrf.mxu0 }
  0xa2   : > { %v405_v16 = vsel %vm403_vm2, %v395_v15, -inf }
  0xa3   : > { %v412_v17 = vsel %vm408_vm3, %v405_v16, -inf }
  0xa4   : > { %413 = vmax.xlane.f32.xlu0 %v412_v17 }
 0x10f   : > { %v411_v20 = vpop.xlane.xlu0 %410 }
 0x110   : > { %v415_v21 = vmax.f32 %v406_v19, %v411_v20 }
 0x112   : > { %v417_v22 = vsub.f32 %v406_v19, %v415_v21  ;;  %496 = vst.msk [vmem:[#allocation2] sm:$0xff] %vm353_vm1, %v415_v21  ;;  %425 = vperm.xlu1 %768, %v415_v21  }
 0x114   : > { %v419_v23 = vmul.f32 1.442695, %v417_v22 }
 0x116   : > { %771 = vpow2.f32 %v419_v23 }
 0x117   : > { %v414_v25 = vpop.xlane.xlu0 %413 }
 0x118   : > { %v416_v26 = vmax.f32 %v407_v24, %v414_v25 }
 0x11a   : > { %v418_v27 = vsub.f32 %v407_v24, %v416_v26  ;;  %497 = vst.msk [vmem:[#allocation2 + $0x8] sm:$0xff] %vm353_vm1, %v416_v26  ;;  %430 = vperm.xlu1 %768, %v416_v26  }
 0x11c   : > { %v772_v28 = vpop.eup %771  ;;  %v421_v29 = vmul.f32 1.442695, %v418_v27 }
 0x11d   : > { %458 = vperm.xlu0 %769, %v772_v28   ;;  %v441_v44 = vmul.f32 %v772_v28, %v439_v43 }
 0x11e   : > { %773 = vpow2.f32 %v421_v29 }
 0x124   : > { %v774_v30 = vpop.eup %773 }
 0x125   : > { %463 = vperm.xlu1 %768, %v774_v30   ;;  %v442_v48 = vmul.f32 %v774_v30, %v440_v47 }
 0x184   : > { %v426_v32 = vpop.permute.xlu1 %425 }
 0x185   : > { %v433_v33 = vsub.f32 %v404_v13, %v426_v32 }
 0x187   : > { %v435_v34 = vmul.f32 1.442695, %v433_v33 }
 0x189   : > { %775 = vpow2.f32 %v435_v34 }
 0x18c   : > { %v431_v35 = vpop.permute.xlu1 %430 }
 0x18d   : > { %v434_v36 = vsub.f32 %v405_v16, %v431_v35 }
 0x18f   : > { %v776_v37 = vpop.eup %775  ;;  %v437_v38 = vmul.f32 1.442695, %v434_v36  ;;  %v459_v53 = vpop.permute.xlu0 %458 }
 0x190   : > { %v443_v39 = vsel %vm408_vm3, %v776_v37, 0.0  ;;  %v466_v55 = vmul.f32 %v459_v53, %v454_v52 }
 0x191   : > { %777 = vpow2.f32 %v437_v38  ;;  %444 = vadd.xlane.f32.xlu2 %v443_v39 }
 0x197   : > { %v778_v40 = vpop.eup %777  ;;  %v464_v60 = vpop.permute.xlu1 %463 }
 0x198   : > { %v446_v41 = vsel %vm408_vm3, %v778_v40, 0.0  ;;  %v468_v42 = vpack.c.bf16 %v778_v40, %v776_v37  ;;  %v467_v62 = vmul.f32 %v464_v60, %v455_v59 }
 0x199   : > { %447 = vadd.xlane.f32.xlu2 %v446_v41 }
 0x19a   : > { %716 = vmatmul.msk.bf16.vlgmr.msra.gmra.mxu1 %vm408_vm3, %v468_v42 }
 0x204   : > { %v445_v45 = vpop.xlane.xlu2 %444 }
 0x205   : > { %v449_v46 = vadd.f32 %v445_v45, %v441_v44 }
 0x207   : > { %452 = vst.msk [vmem:[#allocation3] sm:$0xff] %vm353_vm1, %v449_v46 }
 0x20c   : > { %v448_v49 = vpop.xlane.xlu2 %447 }
 0x20d   : > { %v450_v50 = vadd.f32 %v448_v49, %v442_v48 }
 0x20e   : > { %v501_v51 = vld [vmem:[#allocation3] sm:$0xff] }
 0x20f   : > { %453 = vst.msk [vmem:[#allocation3 + $0x8] sm:$0xff] %vm353_vm1, %v450_v50  ;;  %779 = vrcp.f32 %v501_v51 }
 0x215   : > { %v780_v54 = vpop.eup %779 }
 0x216   : > { %509 = vperm.xlu2 %770, %v780_v54   ;;  %v502_v56 = vld [vmem:[#allocation3 + $0x8] sm:$0xff] }
 0x217   : > { %v487_v57 = vpop.f32.mrf.mxu1  ;;  %781 = vrcp.f32 %v502_v56 }
 0x218   : > { %v492_v58 = vadd.f32 %v487_v57, %v466_v55 }
 0x21a   : > { %494 = vst.msk [vmem:[#allocation4] sm:$0xff] %vm358_vm0, %v492_v58 }
 0x21d   : > { %v782_v61 = vpop.eup %781 }
 0x21e   : > { %514 = vperm.xlu1 %768, %v782_v61  }
 0x21f   : > { %v489_v63 = vpop.f32.mrf.mxu1 }
 0x220   : > { %v493_v0 = vadd.f32 %v489_v63, %v467_v62 }
 0x221   : > { %v505_v2 = vld [vmem:[#allocation4] sm:$0xff] }
 0x222   : > { %495 = vst.msk [vmem:[#allocation4 + $0x8] sm:$0xff] %vm358_vm0, %v493_v0 }
 0x229   : > { %v506_v5 = vld [vmem:[#allocation4 + $0x8] sm:$0xff] }
 0x270   : > { %v510_v1 = vpop.permute.xlu2 %509 }
 0x271   : > { %v517_v3 = vmul.f32 %v510_v1, %v505_v2 }
 0x273   : > { %v519_v4 = vpack.c.bf16 %v517_v3, %v517_v3 }
 0x275   : > { %522 = vst.msk [vmem:[%s346_s7] sm:$0xf] %vm521_vm4, %v519_v4 }
 0x290   : > { %v515_v6 = vpop.permute.xlu1 %514 }
 0x291   : > { %v518_v7 = vmul.f32 %v515_v6, %v506_v5 }
 0x293   : > { %v520_v8 = vpack.c.bf16 %v518_v7, %v518_v7 }
 0x295   : > { %523 = vst.msk [vmem:[%s346_s7 + $0x4] sm:$0xf] %vm521_vm4, %v520_v8 }
 0x296 PF: > { %s13_s16 = sadd.s32 1, %s821_s16   ;;  %s932_s12 = smov %s813_s14 }
 0x297   : > { %p10_p7 = scmp.ge.s32.totalorder %s13_s16, 6   ;;  %s933_s13 = smov %s817_s15 }
 0x298   : > { %s934_s14 = smov %s937_s17  ;;  %s935_s15 = smov %s941_s18 }
 0x299   :  { %12 = sbr.rel (!%p10_p7) target bundleno = 3 (0x3), region = 76 }

</bundles_post_ra>
